<compile_context>
chip_gen: v5e
topology: v5e:2x2
jax: 0.10.0
libtpu: 0.0.40
codegen_flags: <defaults>
</compile_context>

<pallas_src>
import functools

import jax
import jax.numpy as jnp
from jax.experimental import pallas as pl
from jax.experimental.pallas import tpu as pltpu

_LANE = 128
_SUBLANE = 8


def _round_up(n, m):
    return ((n + m - 1) // m) * m


def _cdiv(a, b):
    return -(-a // b)


def _fcn_kernel(*refs, num_layers, out_dims_padded):
    """Fused FCN.  refs = (x, w_0 .. w_{L-1}, biases, out).

    Weights are bf16 (MXU-native); activations, bias-add and ReLU stay f32
    (native VPU path on v5e); accumulation is f32 via preferred_element_type.
    """
    x_ref = refs[0]
    w_refs = refs[1:1 + num_layers]
    b_ref = refs[1 + num_layers]
    o_ref = refs[-1]

    h = x_ref[...]  # f32 (tb, d_in_pad)
    for layer in range(num_layers):
        d_out_p = out_dims_padded[layer]
        w = w_refs[layer][...]                         # bf16 (d_prev_p, d_out_p)
        acc = jnp.dot(h.astype(jnp.bfloat16), w,
                      preferred_element_type=jnp.float32)
        b = b_ref[layer:layer + 1, :d_out_p]           # f32 (1, d_out_p)
        h = acc + b
        if layer < num_layers - 1:
            h = jnp.maximum(h, 0.0)
    o_ref[...] = h.astype(o_ref.dtype)


def init_fcn_params(key, input_dim, output_dim, hidden_dims):
    """Deterministic init mirroring nn.Linear's default (uniform +-1/sqrt(fan_in)).

    Returns a list of (w, b) with w: (d_in, d_out), b: (d_out,) — unpadded f32.
    """
    dims = [input_dim] + list(hidden_dims) + [output_dim]
    params = []
    for i in range(len(dims) - 1):
        d_in, d_out = dims[i], dims[i + 1]
        key, kw, kb = jax.random.split(key, 3)
        bound = 1.0 / jnp.sqrt(jnp.float32(d_in))
        w = jax.random.uniform(kw, (d_in, d_out), jnp.float32, -bound, bound)
        b = jax.random.uniform(kb, (d_out,), jnp.float32, -bound, bound)
        params.append((w, b))
    return params


def prepare_fcn_params(params):
    """Lane-pad weights (-> bf16) and consolidate biases into one f32 array.

    Returns (weights, biases):
      weights: list of bf16 (d_in_p, d_out_p), zero-padded to multiples of 128.
      biases:  f32 (num_layers, max_d_out_p), zero-padded.
    """
    num_layers = len(params)
    out_pads = [_round_up(w.shape[1], _LANE) for w, _ in params]
    d_out_max_p = max(out_pads)

    weights = []
    biases = jnp.zeros((num_layers, d_out_max_p), jnp.float32)
    for layer, (w, b) in enumerate(params):
        d_in, d_out = w.shape
        d_in_p = _round_up(d_in, _LANE)
        d_out_p = out_pads[layer]
        w_p = jnp.zeros((d_in_p, d_out_p), jnp.float32).at[:d_in, :d_out].set(w)
        weights.append(w_p.astype(jnp.bfloat16))
        biases = biases.at[layer, :d_out].set(b)
    return weights, biases


def _pick_batch_tile(b_pad8, max_tile=512):
    """Batch tile: multiple of 8, <= max_tile, >= 2 grid steps when the batch
    allows it (so the 'parallel' grid axis can shard across v7x's 2 TCs), and
    minimal row-padding waste for awkward batch sizes."""
    if b_pad8 <= _SUBLANE:
        return b_pad8
    steps = max(2, _cdiv(b_pad8, max_tile))
    return _round_up(_cdiv(b_pad8, steps), _SUBLANE)


def fcn_forward(x, weights, biases, output_dim):
    """Run the fused FCN Pallas kernel.

    x: (B, input_dim) f32.  weights/biases from prepare_fcn_params.
    Returns (B, output_dim) f32.
    """
    B, d_in = x.shape
    num_layers = len(weights)
    d_in_pad = int(weights[0].shape[0])
    out_dims_padded = tuple(int(w.shape[1]) for w in weights)
    d_last_pad = out_dims_padded[-1]

    b_pad8 = _round_up(B, _SUBLANE)
    tb = _pick_batch_tile(b_pad8)
    num_steps = _cdiv(b_pad8, tb)
    B_pad = tb * num_steps

    # Single padding op; padded rows/cols are zero and sliced away below.
    x_pad = jnp.pad(x, ((0, B_pad - B), (0, d_in_pad - d_in)))

    kernel = functools.partial(_fcn_kernel, num_layers=num_layers,
                               out_dims_padded=out_dims_padded)

    def _vmem_bytes(single_buffer):
        wbuf = 1 if single_buffer else 2
        w_bytes = sum(int(w.size) * 2 for w in weights) * wbuf      # bf16
        b_bytes = int(biases.size) * 4 * wbuf
        io_bytes = 2 * tb * (d_in_pad + d_last_pad) * 4             # x/out dbl-buf
        act_bytes = 2 * tb * max(out_dims_padded) * 4               # live activations
        return w_bytes + b_bytes + io_bytes + act_bytes

    def run(single_buffer_weights):
        spec_kwargs = {}
        if single_buffer_weights:
            # Constant index_map -> no benefit from double-buffering; halve
            # resident weight VMEM.
            spec_kwargs = dict(pipeline_mode=pl.Buffered(1))
        wb_specs = [pl.BlockSpec(w.shape, lambda i: (0, 0), **spec_kwargs)
                    for w in weights]
        wb_specs.append(pl.BlockSpec(biases.shape, lambda i: (0, 0),
                                     **spec_kwargs))

        vmem_limit = int(min(64 << 20,
                             max(32 << 20, 2 * _vmem_bytes(single_buffer_weights))))

        return pl.pallas_call(
            kernel,
            out_shape=jax.ShapeDtypeStruct((B_pad, d_last_pad), jnp.float32),
            grid=(num_steps,),
            in_specs=[pl.BlockSpec((tb, d_in_pad), lambda i: (i, 0))] + wb_specs,
            out_specs=pl.BlockSpec((tb, d_last_pad), lambda i: (i, 0)),
            compiler_params=pltpu.CompilerParams(
                dimension_semantics=("parallel",),
                vmem_limit_bytes=vmem_limit,
            ),
        )(x_pad, *weights, biases)

    if hasattr(pl, "Buffered"):
        try:
            out_pad = run(True)
        except Exception:
            # Fallback if this JAX build rejects single-buffered specs.
            out_pad = run(False)
    else:
        out_pad = run(False)

    return out_pad[:B, :output_dim]


if __name__ == "__main__":
    # Small shapes consistent with the module: batch=8, input_dim=16,
    # hidden_dims=[32, 32], output_dim=8.
    key = jax.random.PRNGKey(0)
    key, kx = jax.random.split(key)

    batch = 8
    input_dim = 16
    output_dim = 8
    hidden_dims = [32, 32]

    x = jax.random.normal(kx, (batch, input_dim), jnp.float32)
    params = init_fcn_params(key, input_dim, output_dim, hidden_dims)
    weights, biases = prepare_fcn_params(params)

    out = fcn_forward(x, weights, biases, output_dim)
    out = jax.block_until_ready(out)

    # Pure-JAX f32 reference of the same math on the original (unpadded) params.
    ref = x
    for w, b in params[:-1]:
        ref = jnp.maximum(ref @ w + b, 0.0)
    ref = ref @ params[-1][0] + params[-1][1]

    assert out.shape == (batch, output_dim)
    # bf16 matmul operands (f32 accumulate) -> loosened tolerance vs f32 ref.
    assert jnp.allclose(out, ref, atol=3e-2, rtol=3e-2), (
        float(jnp.max(jnp.abs(out - ref))))

    print("KERNEL_OK")
</pallas_src>

<mosaic_0001>
module attributes {stable_mosaic.version = 11 : i64} {
  func.func @_fcn_kernel(%arg0: i32, %arg1: memref<8x128xf32, #tpu.memory_space<vmem>>, %arg2: memref<128x128xbf16, #tpu.memory_space<vmem>>, %arg3: memref<128x128xbf16, #tpu.memory_space<vmem>>, %arg4: memref<128x128xbf16, #tpu.memory_space<vmem>>, %arg5: memref<3x128xf32, #tpu.memory_space<vmem>>, %arg6: memref<8x128xf32, #tpu.memory_space<vmem>>) attributes {dimension_semantics = [#tpu.dimension_semantics<parallel>], iteration_bounds = array<i64: 1>, scalar_prefetch = 0 : i64, scratch_operands = 0 : i64, tpu.core_type = #tpu.core_type<tc>, window_params = [{transform_indices = @transform_0, window_bounds = array<i64: 8, 128>}, {pipeline_mode = #tpu.pipeline_mode<synchronous>, transform_indices = @transform_1, window_bounds = array<i64: 128, 128>}, {pipeline_mode = #tpu.pipeline_mode<synchronous>, transform_indices = @transform_2, window_bounds = array<i64: 128, 128>}, {pipeline_mode = #tpu.pipeline_mode<synchronous>, transform_indices = @transform_3, window_bounds = array<i64: 128, 128>}, {pipeline_mode = #tpu.pipeline_mode<synchronous>, transform_indices = @transform_4, window_bounds = array<i64: 3, 128>}, {transform_indices = @transform_5, window_bounds = array<i64: 8, 128>}]} {
    %c0 = arith.constant 0 : index
    %c0_0 = arith.constant 0 : index
    %0 = vector.load %arg1[%c0, %c0_0] : memref<8x128xf32, #tpu.memory_space<vmem>>, vector<8x128xf32>
    %c0_1 = arith.constant 0 : index
    %c0_2 = arith.constant 0 : index
    %1 = vector.load %arg2[%c0_1, %c0_2] : memref<128x128xbf16, #tpu.memory_space<vmem>>, vector<128x128xbf16>
    %2 = arith.truncf %0 : vector<8x128xf32> to vector<8x128xbf16>
    %cst = arith.constant dense<0.000000e+00> : vector<8x128xf32>
    %3 = tpu.matmul %2, %1, %cst {dimension_numbers = #tpu.dot_dimension_numbers<[1], [0], [0], [1], [0, 0, 1, 1], [], []>} : vector<8x128xbf16>, vector<128x128xbf16>, vector<8x128xf32> -> vector<8x128xf32>
    %c0_3 = arith.constant 0 : index
    %c0_4 = arith.constant 0 : index
    %4 = vector.load %arg5[%c0_3, %c0_4] : memref<3x128xf32, #tpu.memory_space<vmem>>, vector<1x128xf32>
    %5 = vector.broadcast %4 : vector<1x128xf32> to vector<8x128xf32>
    %6 = arith.addf %3, %5 : vector<8x128xf32>
    %cst_5 = arith.constant 0.000000e+00 : f32
    %7 = vector.broadcast %cst_5 : f32 to vector<8x128xf32>
    %8 = arith.maximumf %6, %7 : vector<8x128xf32>
    %c0_6 = arith.constant 0 : index
    %c0_7 = arith.constant 0 : index
    %9 = vector.load %arg3[%c0_6, %c0_7] : memref<128x128xbf16, #tpu.memory_space<vmem>>, vector<128x128xbf16>
    %10 = arith.truncf %8 : vector<8x128xf32> to vector<8x128xbf16>
    %cst_8 = arith.constant dense<0.000000e+00> : vector<8x128xf32>
    %11 = tpu.matmul %10, %9, %cst_8 {dimension_numbers = #tpu.dot_dimension_numbers<[1], [0], [0], [1], [0, 0, 1, 1], [], []>} : vector<8x128xbf16>, vector<128x128xbf16>, vector<8x128xf32> -> vector<8x128xf32>
    %c1 = arith.constant 1 : index
    %c0_9 = arith.constant 0 : index
    %12 = vector.load %arg5[%c1, %c0_9] : memref<3x128xf32, #tpu.memory_space<vmem>>, vector<1x128xf32>
    %13 = vector.broadcast %12 : vector<1x128xf32> to vector<8x128xf32>
    %14 = arith.addf %11, %13 : vector<8x128xf32>
    %cst_10 = arith.constant 0.000000e+00 : f32
    %15 = vector.broadcast %cst_10 : f32 to vector<8x128xf32>
    %16 = arith.maximumf %14, %15 : vector<8x128xf32>
    %c0_11 = arith.constant 0 : index
    %c0_12 = arith.constant 0 : index
    %17 = vector.load %arg4[%c0_11, %c0_12] : memref<128x128xbf16, #tpu.memory_space<vmem>>, vector<128x128xbf16>
    %18 = arith.truncf %16 : vector<8x128xf32> to vector<8x128xbf16>
    %cst_13 = arith.constant dense<0.000000e+00> : vector<8x128xf32>
    %19 = tpu.matmul %18, %17, %cst_13 {dimension_numbers = #tpu.dot_dimension_numbers<[1], [0], [0], [1], [0, 0, 1, 1], [], []>} : vector<8x128xbf16>, vector<128x128xbf16>, vector<8x128xf32> -> vector<8x128xf32>
    %c2 = arith.constant 2 : index
    %c0_14 = arith.constant 0 : index
    %20 = vector.load %arg5[%c2, %c0_14] : memref<3x128xf32, #tpu.memory_space<vmem>>, vector<1x128xf32>
    %21 = vector.broadcast %20 : vector<1x128xf32> to vector<8x128xf32>
    %22 = arith.addf %19, %21 : vector<8x128xf32>
    %c0_15 = arith.constant 0 : index
    %c0_16 = arith.constant 0 : index
    %23 = vector.load %arg6[%c0_15, %c0_16] : memref<8x128xf32, #tpu.memory_space<vmem>>, vector<8x128xf32>
    tpu.vector_store %arg6[%c0_15, %c0_16], %22 {strides = array<i32>} : memref<8x128xf32, #tpu.memory_space<vmem>>, vector<8x128xf32>,
    return
  }
  func.func @transform_0(%arg0: i32) -> (i32, i32) {
    %c0_i32 = arith.constant 0 : i32
    %c0_i32_0 = arith.constant 0 : i32
    return %arg0, %c0_i32 : i32, i32
  }
  func.func @transform_1(%arg0: i32) -> (i32, i32) {
    %c0_i32 = arith.constant 0 : i32
    %c0_i32_0 = arith.constant 0 : i32
    %c0_i32_1 = arith.constant 0 : i32
    return %c0_i32, %c0_i32_0 : i32, i32
  }
  func.func @transform_2(%arg0: i32) -> (i32, i32) {
    %c0_i32 = arith.constant 0 : i32
    %c0_i32_0 = arith.constant 0 : i32
    %c0_i32_1 = arith.constant 0 : i32
    return %c0_i32, %c0_i32_0 : i32, i32
  }
  func.func @transform_3(%arg0: i32) -> (i32, i32) {
    %c0_i32 = arith.constant 0 : i32
    %c0_i32_0 = arith.constant 0 : i32
    %c0_i32_1 = arith.constant 0 : i32
    return %c0_i32, %c0_i32_0 : i32, i32
  }
  func.func @transform_4(%arg0: i32) -> (i32, i32) {
    %c0_i32 = arith.constant 0 : i32
    %c0_i32_0 = arith.constant 0 : i32
    %c0_i32_1 = arith.constant 0 : i32
    return %c0_i32, %c0_i32_0 : i32, i32
  }
  func.func @transform_5(%arg0: i32) -> (i32, i32) {
    %c0_i32 = arith.constant 0 : i32
    %c0_i32_0 = arith.constant 0 : i32
    return %arg0, %c0_i32 : i32, i32
  }
}

module attributes {stable_mosaic.version = 11 : i64} {
  func.func @_fcn_kernel(%arg0: i32, %arg1: memref<8x128xf32, #tpu.memory_space<vmem>>, %arg2: memref<128x128xbf16, #tpu.memory_space<vmem>>, %arg3: memref<128x128xbf16, #tpu.memory_space<vmem>>, %arg4: memref<128x128xbf16, #tpu.memory_space<vmem>>, %arg5: memref<3x128xf32, #tpu.memory_space<vmem>>, %arg6: memref<8x128xf32, #tpu.memory_space<vmem>>) attributes {dimension_semantics = [#tpu.dimension_semantics<parallel>], iteration_bounds = array<i64: 1>, scalar_prefetch = 0 : i64, scratch_operands = 0 : i64, tpu.core_type = #tpu.core_type<tc>, window_params = [{transform_indices = @transform_0, window_bounds = array<i64: 8, 128>}, {pipeline_mode = #tpu.pipeline_mode<synchronous>, transform_indices = @transform_1, window_bounds = array<i64: 128, 128>}, {pipeline_mode = #tpu.pipeline_mode<synchronous>, transform_indices = @transform_2, window_bounds = array<i64: 128, 128>}, {pipeline_mode = #tpu.pipeline_mode<synchronous>, transform_indices = @transform_3, window_bounds = array<i64: 128, 128>}, {pipeline_mode = #tpu.pipeline_mode<synchronous>, transform_indices = @transform_4, window_bounds = array<i64: 3, 128>}, {transform_indices = @transform_5, window_bounds = array<i64: 8, 128>}]} {
    %c0 = arith.constant 0 : index
    %c0_0 = arith.constant 0 : index
    %0 = vector.load %arg1[%c0, %c0_0] : memref<8x128xf32, #tpu.memory_space<vmem>>, vector<8x128xf32>
    %c0_1 = arith.constant 0 : index
    %c0_2 = arith.constant 0 : index
    %1 = vector.load %arg2[%c0_1, %c0_2] : memref<128x128xbf16, #tpu.memory_space<vmem>>, vector<128x128xbf16>
    %2 = arith.truncf %0 : vector<8x128xf32> to vector<8x128xbf16>
    %cst = arith.constant dense<0.000000e+00> : vector<8x128xf32>
    %3 = tpu.matmul %2, %1, %cst {dimension_numbers = #tpu.dot_dimension_numbers<[1], [0], [0], [1], [0, 0, 1, 1], [], []>} : vector<8x128xbf16>, vector<128x128xbf16>, vector<8x128xf32> -> vector<8x128xf32>
    %c0_3 = arith.constant 0 : index
    %c0_4 = arith.constant 0 : index
    %4 = vector.load %arg5[%c0_3, %c0_4] : memref<3x128xf32, #tpu.memory_space<vmem>>, vector<1x128xf32>
    %5 = vector.broadcast %4 : vector<1x128xf32> to vector<8x128xf32>
    %6 = arith.addf %3, %5 : vector<8x128xf32>
    %cst_5 = arith.constant 0.000000e+00 : f32
    %7 = vector.broadcast %cst_5 : f32 to vector<8x128xf32>
    %8 = arith.maximumf %6, %7 : vector<8x128xf32>
    %c0_6 = arith.constant 0 : index
    %c0_7 = arith.constant 0 : index
    %9 = vector.load %arg3[%c0_6, %c0_7] : memref<128x128xbf16, #tpu.memory_space<vmem>>, vector<128x128xbf16>
    %10 = arith.truncf %8 : vector<8x128xf32> to vector<8x128xbf16>
    %cst_8 = arith.constant dense<0.000000e+00> : vector<8x128xf32>
    %11 = tpu.matmul %10, %9, %cst_8 {dimension_numbers = #tpu.dot_dimension_numbers<[1], [0], [0], [1], [0, 0, 1, 1], [], []>} : vector<8x128xbf16>, vector<128x128xbf16>, vector<8x128xf32> -> vector<8x128xf32>
    %c1 = arith.constant 1 : index
    %c0_9 = arith.constant 0 : index
    %12 = vector.load %arg5[%c1, %c0_9] : memref<3x128xf32, #tpu.memory_space<vmem>>, vector<1x128xf32>
    %13 = vector.broadcast %12 : vector<1x128xf32> to vector<8x128xf32>
    %14 = arith.addf %11, %13 : vector<8x128xf32>
    %cst_10 = arith.constant 0.000000e+00 : f32
    %15 = vector.broadcast %cst_10 : f32 to vector<8x128xf32>
    %16 = arith.maximumf %14, %15 : vector<8x128xf32>
    %c0_11 = arith.constant 0 : index
    %c0_12 = arith.constant 0 : index
    %17 = vector.load %arg4[%c0_11, %c0_12] : memref<128x128xbf16, #tpu.memory_space<vmem>>, vector<128x128xbf16>
    %18 = arith.truncf %16 : vector<8x128xf32> to vector<8x128xbf16>
    %cst_13 = arith.constant dense<0.000000e+00> : vector<8x128xf32>
    %19 = tpu.matmul %18, %17, %cst_13 {dimension_numbers = #tpu.dot_dimension_numbers<[1], [0], [0], [1], [0, 0, 1, 1], [], []>} : vector<8x128xbf16>, vector<128x128xbf16>, vector<8x128xf32> -> vector<8x128xf32>
    %c2 = arith.constant 2 : index
    %c0_14 = arith.constant 0 : index
    %20 = vector.load %arg5[%c2, %c0_14] : memref<3x128xf32, #tpu.memory_space<vmem>>, vector<1x128xf32>
    %21 = vector.broadcast %20 : vector<1x128xf32> to vector<8x128xf32>
    %22 = arith.addf %19, %21 : vector<8x128xf32>
    %c0_15 = arith.constant 0 : index
    %c0_16 = arith.constant 0 : index
    %23 = vector.load %arg6[%c0_15, %c0_16] : memref<8x128xf32, #tpu.memory_space<vmem>>, vector<8x128xf32>
    tpu.vector_store %arg6[%c0_15, %c0_16], %22 {strides = array<i32>} : memref<8x128xf32, #tpu.memory_space<vmem>>, vector<8x128xf32>,
    return
  }
  func.func @transform_0(%arg0: i32) -> (i32, i32) {
    %c0_i32 = arith.constant 0 : i32
    %c0_i32_0 = arith.constant 0 : i32
    return %arg0, %c0_i32 : i32, i32
  }
  func.func @transform_1(%arg0: i32) -> (i32, i32) {
    %c0_i32 = arith.constant 0 : i32
    %c0_i32_0 = arith.constant 0 : i32
    %c0_i32_1 = arith.constant 0 : i32
    return %c0_i32, %c0_i32_0 : i32, i32
  }
  func.func @transform_2(%arg0: i32) -> (i32, i32) {
    %c0_i32 = arith.constant 0 : i32
    %c0_i32_0 = arith.constant 0 : i32
    %c0_i32_1 = arith.constant 0 : i32
    return %c0_i32, %c0_i32_0 : i32, i32
  }
  func.func @transform_3(%arg0: i32) -> (i32, i32) {
    %c0_i32 = arith.constant 0 : i32
    %c0_i32_0 = arith.constant 0 : i32
    %c0_i32_1 = arith.constant 0 : i32
    return %c0_i32, %c0_i32_0 : i32, i32
  }
  func.func @transform_4(%arg0: i32) -> (i32, i32) {
    %c0_i32 = arith.constant 0 : i32
    %c0_i32_0 = arith.constant 0 : i32
    %c0_i32_1 = arith.constant 0 : i32
    return %c0_i32, %c0_i32_0 : i32, i32
  }
  func.func @transform_5(%arg0: i32) -> (i32, i32) {
    %c0_i32 = arith.constant 0 : i32
    %c0_i32_0 = arith.constant 0 : i32
    return %arg0, %c0_i32 : i32, i32
  }
}

</mosaic_0001>

<bundles_post_ra>
// kernel: tpu_custom_call.1
= control target key start
LH: loop header
LB: loop body
LE: loop exit
PB: predicated region body
PF: predicated region fallthrough
CT: control target
= control target key end

     0   :  { %10 = vsyncpa [#allocation3], 0  ;;  %s697_s0 = inlined_call_operand.hbm [shape: f32[8,128], index: 0, kind: input, shape index: {}]   ;;  %s698_s1 = inlined_call_operand.hbm [shape: bf16[128,128], index: 1, kind: input, shape index: {}]   ;;  %s699_s2 = inlined_call_operand.hbm [shape: bf16[128,128], index: 2, kind: input, shape index: {}]   ;;  %s700_s3 = inlined_call_operand.hbm [shape: bf16[128,128], index: 3, kind: input, shape index: {}]   ;;  %s701_s4 = inlined_call_operand.hbm [shape: f32[3,128], index: 4, kind: input, shape index: {}]   ;;  %s702_s5 = inlined_call_operand.hbm [shape: f32[8,128], index: 5, kind: output, shape index: {}]  }
   0x1   :  { %11 = vsyncpa [#allocation6], 0 }
   0x2   :  { %12 = vsyncpa [#allocation9], 0  ;;  %s29_s20 = sshll.u32 %s698_s1, 4  ;;  %s30_s20 = int_to_ptr.hbm [resolvable:$true] %s29_s20 }
   0x3   :  { %13 = vsyncpa [#allocation4], 0  ;;  %s641_s21 = smov [#allocation5]   ;;  %s55_s25 = sshll.u32 %s700_s3, 4  ;;  %s56_s25 = int_to_ptr.hbm [resolvable:$true] %s55_s25 }
   0x4   :  { %s31_s22 = sshll.u32 %s641_s21, 4  ;;  %s642_s26 = smov 64   ;;  %s32_s22 = int_to_ptr.vmem [resolvable:$true] %s31_s22 }
   0x5   :  { %s643_s27 = smov 4   ;;  %s644_s28 = smov [#allocation8]  }
   0x6   :  { %37 = dma.hbm_to_vmem [thread:$0]  %s30_s20, 1024, %s32_s22, [#allocation6], %s642_s26, %s642_s26, %s643_s27  }
   0x7   :  { %s57_s29 = sshll.u32 %s644_s28, 4  ;;  %s19_s7 = sshll.u32 %s697_s0, 4  ;;  %s58_s29 = int_to_ptr.vmem [resolvable:$true] %s57_s29  ;;  %s20_s7 = int_to_ptr.hbm [resolvable:$true] %s19_s7 }
   0x8   :  { %63 = dma.hbm_to_vmem [thread:$0]  %s56_s25, 1024, %s58_s29, [#allocation9], %s642_s26, %s642_s26, %s643_s27  }
   0x9   :  { %s42_s9 = sshll.u32 %s699_s2, 4  ;;  %s645_s10 = smov [#allocation2]   ;;  %s43_s9 = int_to_ptr.hbm [resolvable:$true] %s42_s9 }
   0xa   :  { %s21_s11 = sshll.u32 %s645_s10, 4  ;;  %s646_s3 = smov [#allocation7]   ;;  %s22_s11 = int_to_ptr.vmem [resolvable:$true] %s21_s11 }
   0xb   :  { %24 = dma.hbm_to_vmem [thread:$0]  %s20_s7, 128, %s22_s11, [#allocation3]  }
   0xc   :  { %s44_s12 = sshll.u32 %s646_s3, 4  ;;  %s69_s15 = sshll.u32 %s701_s4, 4  ;;  %s45_s12 = int_to_ptr.vmem [resolvable:$true] %s44_s12  ;;  %s70_s15 = int_to_ptr.hbm [resolvable:$true] %s69_s15 }
   0xd   :  { %50 = dma.hbm_to_vmem [thread:$0]  %s43_s9, 1024, %s45_s12, [#allocation6], %s642_s26, %s642_s26, %s643_s27  }
   0xe   :  { %s647_s0 = smov [#allocation10]  }
   0xf   :  { %s71_s16 = sshll.u32 %s647_s0, 4  ;;  %s72_s16 = int_to_ptr.vmem [resolvable:$true] %s71_s16 }
  0x10   :  { %74 = dma.hbm_to_vmem [thread:$0]  %s70_s15, 64, %s72_s16, [#allocation9]  }
  0x11   :  { %633 = dma.done.wait [#allocation3], 128  }
  0x12   :  { %634 = vsyncadd [#allocation3], 4294967168 }
  0x13   :  { %635 = dma.done.wait [#allocation6], 2048  }
  0x14   :  { %636 = vsyncadd [#allocation6], 4294965248 }
  0x15   :  { %637 = dma.done.wait [#allocation9], 1088  }
  0x16   :  { %638 = vsyncadd [#allocation9], 4294966208  ;;  %v461_v0 = vld [vmem:[#allocation5 + $0x38] sm:$0xff]  ;;  %v460_v1 = vld [vmem:[#allocation5 + $0x30] sm:$0xff]  ;;  %s648_s2 = smov [#allocation11]   ;;  %s346_s19 = sshll.u32 %s702_s5, 4  ;;  %s347_s19 = int_to_ptr.hbm [resolvable:$true] %s346_s19 }
  0x17   :  { %163 = vmatpush.bf16.msra.mxu0 %v461_v0  ;;  %v469_v2 = vld [vmem:[#allocation7 + $0x38] sm:$0xff]  ;;  %v468_v3 = vld [vmem:[#allocation7 + $0x30] sm:$0xff]  ;;  %v459_v4 = vld [vmem:[#allocation5 + $0x28] sm:$0xff]  ;;  %s344_s4 = sshll.u32 %s648_s2, 4  ;;  %s345_s4 = int_to_ptr.vmem [resolvable:$true] %s344_s4 }
  0x18   :  { %244 = vmatpush.bf16.msra.mxu1 %v469_v2  ;;  %v467_v5 = vld [vmem:[#allocation7 + $0x28] sm:$0xff]  ;;  %v458_v6 = vld [vmem:[#allocation5 + $0x20] sm:$0xff]  ;;  %v457_v8 = vld [vmem:[#allocation5 + $0x18] sm:$0xff] }
  0x19   :  { %v466_v7 = vld [vmem:[#allocation7 + $0x20] sm:$0xff]  ;;  %v465_v9 = vld [vmem:[#allocation7 + $0x18] sm:$0xff]  ;;  %v456_v10 = vld [vmem:[#allocation5 + $0x10] sm:$0xff] }
  0x1a   :  { %v464_v11 = vld [vmem:[#allocation7 + $0x10] sm:$0xff]  ;;  %v455_v12 = vld [vmem:[#allocation5 + $0x8] sm:$0xff]  ;;  %v454_v13 = vld [vmem:[#allocation5] sm:$0xff] }
  0x1b   :  { %164 = vmatpush.bf16.msra.mxu0 %v460_v1  ;;  %v95_v14 = vld [vmem:[#allocation2] sm:$0xff]  ;;  %v463_v16 = vld [vmem:[#allocation7 + $0x8] sm:$0xff]  ;;  %v462_v17 = vld [vmem:[#allocation7] sm:$0xff] }
  0x1c   :  { %245 = vmatpush.bf16.msra.mxu1 %v468_v3  ;;  %v112_v15 = vpack.c.bf16 %v95_v14, %v95_v14  ;;  %v477_v18 = vld [vmem:[#allocation8 + $0x38] sm:$0xff]  ;;  %v476_v19 = vld [vmem:[#allocation8 + $0x30] sm:$0xff]  ;;  %v475_v20 = vld [vmem:[#allocation8 + $0x28] sm:$0xff] }
  0x1d   :  { %325 = vmatpush.bf16.msra.mxu2 %v477_v18  ;;  %v474_v21 = vld [vmem:[#allocation8 + $0x20] sm:$0xff]  ;;  %v473_v22 = vld [vmem:[#allocation8 + $0x18] sm:$0xff]  ;;  %v472_v23 = vld [vmem:[#allocation8 + $0x10] sm:$0xff] }
  0x1e   :  { %v486_v24 = vld [vmem:[#allocation10] ss:$0 sm:$0xff]  ;;  %v471_v30 = vld [vmem:[#allocation8 + $0x8] sm:$0xff]  ;;  %v487_v32 = vld [vmem:[#allocation10 + $0x1] ss:$0 sm:$0xff] }
  0x1f   :  { %165 = vmatpush.bf16.msra.mxu0 %v459_v4  ;;  %v470_v31 = vld [vmem:[#allocation8] sm:$0xff] }
  0x20   :  { %246 = vmatpush.bf16.msra.mxu1 %v467_v5  ;;  %v488_v38 = vld [vmem:[#allocation10 + $0x2] ss:$0 sm:$0xff] }
  0x21   :  { %326 = vmatpush.bf16.msra.mxu2 %v476_v19 }
  0x23   :  { %166 = vmatpush.bf16.msra.mxu0 %v458_v6 }
  0x24   :  { %247 = vmatpush.bf16.msra.mxu1 %v466_v7 }
  0x25   :  { %327 = vmatpush.bf16.msra.mxu2 %v475_v20 }
  0x27   :  { %167 = vmatpush.bf16.msra.mxu0 %v457_v8 }
  0x28   :  { %248 = vmatpush.bf16.msra.mxu1 %v465_v9 }
  0x29   :  { %328 = vmatpush.bf16.msra.mxu2 %v474_v21 }
  0x2b   :  { %168 = vmatpush.bf16.msra.mxu0 %v456_v10 }
  0x2c   :  { %249 = vmatpush.bf16.msra.mxu1 %v464_v11 }
  0x2d   :  { %329 = vmatpush.bf16.msra.mxu2 %v473_v22 }
  0x2f   :  { %169 = vmatpush.bf16.msra.mxu0 %v455_v12 }
  0x30   :  { %250 = vmatpush.bf16.msra.mxu1 %v463_v16 }
  0x31   :  { %330 = vmatpush.bf16.msra.mxu2 %v472_v23 }
  0x33   :  { %170 = vmatpush.bf16.msra.mxu0 %v454_v13 }
  0x34   :  { %251 = vmatpush.bf16.msra.mxu1 %v462_v17 }
  0x35   :  { %331 = vmatpush.bf16.msra.mxu2 %v471_v30 }
  0x36   :  { %171 = vmatmul.bf16.vlgmr.msra.gmra.mxu0 %v112_v15 }
  0x39   :  { %332 = vmatpush.bf16.msra.mxu2 %v470_v31 }
  0xb3   :  { %v172_v25 = vpop.f32.mrf.mxu0 }
  0xb4   :  { %v173_v26 = vadd.f32 %v486_v24, %v172_v25 }
  0xb6   :  { %v176_v27 = vmax.f32 %v173_v26, 0.0 }
  0xb8   :  { %v193_v28 = vpack.c.bf16 %v176_v27, %v176_v27 }
  0xba   :  { %252 = vmatmul.bf16.vlgmr.msra.gmra.mxu1 %v193_v28 }
  0xbb   :  { %v174_v29 = vpop.f32.mrf.mxu0 }
 0x137   :  { %v253_v33 = vpop.f32.mrf.mxu1 }
 0x138   :  { %v254_v34 = vadd.f32 %v487_v32, %v253_v33 }
 0x13a   :  { %v257_v35 = vmax.f32 %v254_v34, 0.0 }
 0x13c   :  { %v274_v36 = vpack.c.bf16 %v257_v35, %v257_v35 }
 0x13e   :  { %333 = vmatmul.bf16.vlgmr.msra.gmra.mxu2 %v274_v36 }
 0x13f   :  { %v255_v37 = vpop.f32.mrf.mxu1 }
 0x1c1   :  { %v334_v39 = vpop.f32.mrf.mxu2 }
 0x1c2   :  { %v335_v40 = vadd.f32 %v488_v38, %v334_v39 }
 0x1c4   :  { %338 = vst [vmem:[#allocation11] sm:$0xff] %v335_v40 }
 0x1c5   :  { %349 = dma.vmem_to_hbm [thread:$0]  %s345_s4, 128, %s347_s19, [#allocation4]  }
 0x1c9   :  { %v336_v41 = vpop.f32.mrf.mxu2 }
 0x1ca   :  { %639 = dma.done.wait [#allocation4], 128  }
 0x1cb   :  { %640 = vsyncadd [#allocation4], 4294967168 }
 0x1cc   :  { %354 = vsyncpa [#allocation3], 1 }
 0x1cd   :  { %355 = vsyncpa [#allocation6], 1 }
 0x1ce   :  { %356 = vsyncpa [#allocation9], 1 }
 0x1cf   :  { %357 = vsyncpa [#allocation4], 1 }

// kernel: tpu_custom_call.1
= control target key start
LH: loop header
LB: loop body
LE: loop exit
PB: predicated region body
PF: predicated region fallthrough
CT: control target
= control target key end

     0   :  { %10 = vsyncpa [#allocation3], 0  ;;  %s697_s0 = inlined_call_operand.hbm [shape: f32[8,128], index: 0, kind: input, shape index: {}]   ;;  %s698_s1 = inlined_call_operand.hbm [shape: bf16[128,128], index: 1, kind: input, shape index: {}]   ;;  %s699_s2 = inlined_call_operand.hbm [shape: bf16[128,128], index: 2, kind: input, shape index: {}]   ;;  %s700_s3 = inlined_call_operand.hbm [shape: bf16[128,128], index: 3, kind: input, shape index: {}]   ;;  %s701_s4 = inlined_call_operand.hbm [shape: f32[3,128], index: 4, kind: input, shape index: {}]   ;;  %s702_s5 = inlined_call_operand.hbm [shape: f32[8,128], index: 5, kind: output, shape index: {}]  }
   0x1   :  { %11 = vsyncpa [#allocation6], 0 }
   0x2   :  { %12 = vsyncpa [#allocation9], 0  ;;  %s29_s20 = sshll.u32 %s698_s1, 4  ;;  %s30_s20 = int_to_ptr.hbm [resolvable:$true] %s29_s20 }
   0x3   :  { %13 = vsyncpa [#allocation4], 0  ;;  %s641_s21 = smov [#allocation5]   ;;  %s55_s25 = sshll.u32 %s700_s3, 4  ;;  %s56_s25 = int_to_ptr.hbm [resolvable:$true] %s55_s25 }
   0x4   :  { %s31_s22 = sshll.u32 %s641_s21, 4  ;;  %s642_s26 = smov 64   ;;  %s32_s22 = int_to_ptr.vmem [resolvable:$true] %s31_s22 }
   0x5   :  { %s643_s27 = smov 4   ;;  %s644_s28 = smov [#allocation8]  }
   0x6   :  { %37 = dma.hbm_to_vmem [thread:$0]  %s30_s20, 1024, %s32_s22, [#allocation6], %s642_s26, %s642_s26, %s643_s27  }
   0x7   :  { %s57_s29 = sshll.u32 %s644_s28, 4  ;;  %s19_s7 = sshll.u32 %s697_s0, 4  ;;  %s58_s29 = int_to_ptr.vmem [resolvable:$true] %s57_s29  ;;  %s20_s7 = int_to_ptr.hbm [resolvable:$true] %s19_s7 }
   0x8   :  { %63 = dma.hbm_to_vmem [thread:$0]  %s56_s25, 1024, %s58_s29, [#allocation9], %s642_s26, %s642_s26, %s643_s27  }
   0x9   :  { %s42_s9 = sshll.u32 %s699_s2, 4  ;;  %s645_s10 = smov [#allocation2]   ;;  %s43_s9 = int_to_ptr.hbm [resolvable:$true] %s42_s9 }
   0xa   :  { %s21_s11 = sshll.u32 %s645_s10, 4  ;;  %s646_s3 = smov [#allocation7]   ;;  %s22_s11 = int_to_ptr.vmem [resolvable:$true] %s21_s11 }
   0xb   :  { %24 = dma.hbm_to_vmem [thread:$0]  %s20_s7, 128, %s22_s11, [#allocation3]  }
   0xc   :  { %s44_s12 = sshll.u32 %s646_s3, 4  ;;  %s69_s15 = sshll.u32 %s701_s4, 4  ;;  %s45_s12 = int_to_ptr.vmem [resolvable:$true] %s44_s12  ;;  %s70_s15 = int_to_ptr.hbm [resolvable:$true] %s69_s15 }
   0xd   :  { %50 = dma.hbm_to_vmem [thread:$0]  %s43_s9, 1024, %s45_s12, [#allocation6], %s642_s26, %s642_s26, %s643_s27  }
   0xe   :  { %s647_s0 = smov [#allocation10]  }
   0xf   :  { %s71_s16 = sshll.u32 %s647_s0, 4  ;;  %s72_s16 = int_to_ptr.vmem [resolvable:$true] %s71_s16 }
  0x10   :  { %74 = dma.hbm_to_vmem [thread:$0]  %s70_s15, 64, %s72_s16, [#allocation9]  }
  0x11   :  { %633 = dma.done.wait [#allocation3], 128  }
  0x12   :  { %634 = vsyncadd [#allocation3], 4294967168 }
  0x13   :  { %635 = dma.done.wait [#allocation6], 2048  }
  0x14   :  { %636 = vsyncadd [#allocation6], 4294965248 }
  0x15   :  { %637 = dma.done.wait [#allocation9], 1088  }
  0x16   :  { %638 = vsyncadd [#allocation9], 4294966208  ;;  %v461_v0 = vld [vmem:[#allocation5 + $0x38] sm:$0xff]  ;;  %v460_v1 = vld [vmem:[#allocation5 + $0x30] sm:$0xff]  ;;  %s648_s2 = smov [#allocation11]   ;;  %s346_s19 = sshll.u32 %s702_s5, 4  ;;  %s347_s19 = int_to_ptr.hbm [resolvable:$true] %s346_s19 }
  0x17   :  { %163 = vmatpush.bf16.msra.mxu0 %v461_v0  ;;  %v469_v2 = vld [vmem:[#allocation7 + $0x38] sm:$0xff]  ;;  %v468_v3 = vld [vmem:[#allocation7 + $0x30] sm:$0xff]  ;;  %v459_v4 = vld [vmem:[#allocation5 + $0x28] sm:$0xff]  ;;  %s344_s4 = sshll.u32 %s648_s2, 4  ;;  %s345_s4 = int_to_ptr.vmem [resolvable:$true] %s344_s4 }
  0x18   :  { %244 = vmatpush.bf16.msra.mxu1 %v469_v2  ;;  %v467_v5 = vld [vmem:[#allocation7 + $0x28] sm:$0xff]  ;;  %v458_v6 = vld [vmem:[#allocation5 + $0x20] sm:$0xff]  ;;  %v457_v8 = vld [vmem:[#allocation5 + $0x18] sm:$0xff] }
  0x19   :  { %v466_v7 = vld [vmem:[#allocation7 + $0x20] sm:$0xff]  ;;  %v465_v9 = vld [vmem:[#allocation7 + $0x18] sm:$0xff]  ;;  %v456_v10 = vld [vmem:[#allocation5 + $0x10] sm:$0xff] }
  0x1a   :  { %v464_v11 = vld [vmem:[#allocation7 + $0x10] sm:$0xff]  ;;  %v455_v12 = vld [vmem:[#allocation5 + $0x8] sm:$0xff]  ;;  %v454_v13 = vld [vmem:[#allocation5] sm:$0xff] }
  0x1b   :  { %164 = vmatpush.bf16.msra.mxu0 %v460_v1  ;;  %v95_v14 = vld [vmem:[#allocation2] sm:$0xff]  ;;  %v463_v16 = vld [vmem:[#allocation7 + $0x8] sm:$0xff]  ;;  %v462_v17 = vld [vmem:[#allocation7] sm:$0xff] }
  0x1c   :  { %245 = vmatpush.bf16.msra.mxu1 %v468_v3  ;;  %v112_v15 = vpack.c.bf16 %v95_v14, %v95_v14  ;;  %v477_v18 = vld [vmem:[#allocation8 + $0x38] sm:$0xff]  ;;  %v476_v19 = vld [vmem:[#allocation8 + $0x30] sm:$0xff]  ;;  %v475_v20 = vld [vmem:[#allocation8 + $0x28] sm:$0xff] }
  0x1d   :  { %325 = vmatpush.bf16.msra.mxu2 %v477_v18  ;;  %v474_v21 = vld [vmem:[#allocation8 + $0x20] sm:$0xff]  ;;  %v473_v22 = vld [vmem:[#allocation8 + $0x18] sm:$0xff]  ;;  %v472_v23 = vld [vmem:[#allocation8 + $0x10] sm:$0xff] }
  0x1e   :  { %v486_v24 = vld [vmem:[#allocation10] ss:$0 sm:$0xff]  ;;  %v471_v30 = vld [vmem:[#allocation8 + $0x8] sm:$0xff]  ;;  %v487_v32 = vld [vmem:[#allocation10 + $0x1] ss:$0 sm:$0xff] }
  0x1f   :  { %165 = vmatpush.bf16.msra.mxu0 %v459_v4  ;;  %v470_v31 = vld [vmem:[#allocation8] sm:$0xff] }
  0x20   :  { %246 = vmatpush.bf16.msra.mxu1 %v467_v5  ;;  %v488_v38 = vld [vmem:[#allocation10 + $0x2] ss:$0 sm:$0xff] }
  0x21   :  { %326 = vmatpush.bf16.msra.mxu2 %v476_v19 }
  0x23   :  { %166 = vmatpush.bf16.msra.mxu0 %v458_v6 }
  0x24   :  { %247 = vmatpush.bf16.msra.mxu1 %v466_v7 }
  0x25   :  { %327 = vmatpush.bf16.msra.mxu2 %v475_v20 }
  0x27   :  { %167 = vmatpush.bf16.msra.mxu0 %v457_v8 }
  0x28   :  { %248 = vmatpush.bf16.msra.mxu1 %v465_v9 }
  0x29   :  { %328 = vmatpush.bf16.msra.mxu2 %v474_v21 }
  0x2b   :  { %168 = vmatpush.bf16.msra.mxu0 %v456_v10 }
  0x2c   :  { %249 = vmatpush.bf16.msra.mxu1 %v464_v11 }
  0x2d   :  { %329 = vmatpush.bf16.msra.mxu2 %v473_v22 }
  0x2f   :  { %169 = vmatpush.bf16.msra.mxu0 %v455_v12 }
  0x30   :  { %250 = vmatpush.bf16.msra.mxu1 %v463_v16 }
  0x31   :  { %330 = vmatpush.bf16.msra.mxu2 %v472_v23 }
  0x33   :  { %170 = vmatpush.bf16.msra.mxu0 %v454_v13 }
  0x34   :  { %251 = vmatpush.bf16.msra.mxu1 %v462_v17 }
  0x35   :  { %331 = vmatpush.bf16.msra.mxu2 %v471_v30 }
  0x36   :  { %171 = vmatmul.bf16.vlgmr.msra.gmra.mxu0 %v112_v15 }
  0x39   :  { %332 = vmatpush.bf16.msra.mxu2 %v470_v31 }
  0xb3   :  { %v172_v25 = vpop.f32.mrf.mxu0 }
  0xb4   :  { %v173_v26 = vadd.f32 %v486_v24, %v172_v25 }
  0xb6   :  { %v176_v27 = vmax.f32 %v173_v26, 0.0 }
  0xb8   :  { %v193_v28 = vpack.c.bf16 %v176_v27, %v176_v27 }
  0xba   :  { %252 = vmatmul.bf16.vlgmr.msra.gmra.mxu1 %v193_v28 }
  0xbb   :  { %v174_v29 = vpop.f32.mrf.mxu0 }
 0x137   :  { %v253_v33 = vpop.f32.mrf.mxu1 }
 0x138   :  { %v254_v34 = vadd.f32 %v487_v32, %v253_v33 }
 0x13a   :  { %v257_v35 = vmax.f32 %v254_v34, 0.0 }
 0x13c   :  { %v274_v36 = vpack.c.bf16 %v257_v35, %v257_v35 }
 0x13e   :  { %333 = vmatmul.bf16.vlgmr.msra.gmra.mxu2 %v274_v36 }
 0x13f   :  { %v255_v37 = vpop.f32.mrf.mxu1 }
 0x1c1   :  { %v334_v39 = vpop.f32.mrf.mxu2 }
 0x1c2   :  { %v335_v40 = vadd.f32 %v488_v38, %v334_v39 }
 0x1c4   :  { %338 = vst [vmem:[#allocation11] sm:$0xff] %v335_v40 }
 0x1c5   :  { %349 = dma.vmem_to_hbm [thread:$0]  %s345_s4, 128, %s347_s19, [#allocation4]  }
 0x1c9   :  { %v336_v41 = vpop.f32.mrf.mxu2 }
 0x1ca   :  { %639 = dma.done.wait [#allocation4], 128  }
 0x1cb   :  { %640 = vsyncadd [#allocation4], 4294967168 }
 0x1cc   :  { %354 = vsyncpa [#allocation3], 1 }
 0x1cd   :  { %355 = vsyncpa [#allocation6], 1 }
 0x1ce   :  { %356 = vsyncpa [#allocation9], 1 }
 0x1cf   :  { %357 = vsyncpa [#allocation4], 1 }

</bundles_post_ra>
